<compile_context>
chip_gen: v7x
topology: tpu7x:2x2x1
jax: 0.10.0
libtpu: 0.0.40
codegen_flags: <defaults>
</compile_context>

<pallas_src>
import functools

import jax
import jax.numpy as jnp
from jax.experimental import pallas as pl
from jax.experimental.pallas import tpu as pltpu

_EPS = 1e-5
# MXU operand dtype (accumulation is always f32 via preferred_element_type);
# all BatchNorm / VPU math stays f32.
MATMUL_DTYPE = jnp.bfloat16


def _up1d_kernel(x1_ref, x2_ref, se_ref, so_ref, wup_ref, bt_ref,
                 w1s_ref, w1u_ref, g1_ref, be1_ref,
                 w2_ref, g2_ref, be2_ref,
                 o_ref,
                 h_ref, sum1_ref, sq1_ref, sum2_ref, sq2_ref,
                 *, N, L2):
    """One (phase, batch) grid step.

    In-kernel activation layout is (channels, length): channels on sublanes,
    length (lane-dense) on lanes.  Every matmul is (Co, C) x (C, L) with the
    length axis lane-dense.
    """
    p = pl.program_id(0)            # phase: 0 = conv1, 1 = conv2, 2 = finalize
    n = pl.program_id(1)            # batch element
    f32 = jnp.float32
    bf = MATMUL_DTYPE
    cnt = f32(N * L2)               # BatchNorm reduction size (global, static)

    pos = jax.lax.broadcasted_iota(jnp.int32, (1, L2), 1)
    not_first = pos > 0             # conv pad: no left neighbour at l == 0
    not_last = pos < L2 - 1         # conv pad: no right neighbour at l == L2-1

    def mm(w, x):                   # bf16 operands, f32 accumulation on the MXU
        return jnp.dot(w, x, preferred_element_type=f32)

    def conv3(xs, w_refs):
        """Conv1d(k=3, padding=1): per-tap channel mixing first (position
        independent), then +/-1 lane shifts via pltpu.roll + boundary masks."""
        def tap(t):
            y = None
            for x, w_ref in zip(xs, w_refs):
                d = mm(w_ref[t], x)
                y = d if y is None else y + d
            return y
        y_prev, y_cur, y_next = tap(0), tap(1), tap(2)
        h = y_cur
        h += jnp.where(not_first, pltpu.roll(y_prev, 1, axis=1), 0.0)
        h += jnp.where(not_last, pltpu.roll(y_next, L2 - 1, axis=1), 0.0)
        return h                    # (Co, L2) f32

    def accumulate(h, s_ref, q_ref):           # global BN sum / sum-of-squares
        @pl.when(n == 0)
        def _():
            s_ref[...] = jnp.zeros_like(s_ref)
            q_ref[...] = jnp.zeros_like(q_ref)
        s_ref[...] += jnp.sum(h, axis=1, keepdims=True)
        q_ref[...] += jnp.sum(h * h, axis=1, keepdims=True)

    def bn_relu(h, s_ref, q_ref, g_ref, be_ref):
        mu = s_ref[...] / cnt                   # (Co, 1) global batch stats
        var = q_ref[...] / cnt - mu * mu        # biased var (torch training mode)
        scale = g_ref[...] * jax.lax.rsqrt(var + _EPS)
        shift = be_ref[...] - mu * scale
        return jnp.maximum(h * scale + shift, 0.0)

    @pl.when(p == 0)
    def _phase0():
        x1b = x1_ref[...].astype(bf)            # (Cin, L1) - cast hoisted
        x2b = x2_ref[...].astype(bf)            # (C2, L2)
        # ConvTranspose1d(k=2, s=2): one matmul per tap on the un-duplicated x1,
        u_even = mm(wup_ref[0], x1b)            # (Co, L1) f32
        u_odd = mm(wup_ref[1], x1b)
        # ... then interleave even/odd lanes with constant 0/1 scatter matmuls
        # (exact in f32; the MXU is otherwise idle at these channel widths).
        # TODO(synk): replace the L1xL2 scatter matrices with a strided lane
        # store / relayout for very long sequences.
        up = (jnp.dot(u_even, se_ref[...], preferred_element_type=f32)
              + jnp.dot(u_odd, so_ref[...], preferred_element_type=f32)
              + bt_ref[...])                    # (Co, L2) f32, + transpose bias
        upb = up.astype(bf)
        # torch.cat([x2, up], dim=1) + Conv1d: conv1's weight is split into its
        # skip / up column blocks, so the concat becomes a sum of two matmuls.
        # Conv biases b1/b2 are omitted: training-mode BN cancels them exactly.
        h1 = conv3([x2b, upb], [w1s_ref, w1u_ref])
        h_ref[n] = h1
        accumulate(h1, sum1_ref, sq1_ref)

    @pl.when(p == 1)
    def _phase1():
        a1 = bn_relu(h_ref[n], sum1_ref, sq1_ref, g1_ref, be1_ref).astype(bf)
        h2 = conv3([a1], [w2_ref])
        h_ref[n] = h2                           # overwrite (h1 no longer needed)
        accumulate(h2, sum2_ref, sq2_ref)

    @pl.when(p == 2)
    def _phase2():
        out = bn_relu(h_ref[n], sum2_ref, sq2_ref, g2_ref, be2_ref)
        o_ref[...] = out.astype(o_ref.dtype)    # lane-dense (Co, L2) store


def up1d_forward(x1_ncl, x2_ncl, p):
    """Up1D forward.  x1: (N, Cin, L1), x2: (N, Cin - Co, 2*L1) -> (N, Co, 2*L1)."""
    N, Cin, L1 = x1_ncl.shape
    N2, C2, L2 = x2_ncl.shape
    Co = p["wt"].shape[1]
    # The torch forward's F.pad aliases diffY through an in-place div_; the
    # lengths only line up when diffY == 0, so that is required here as well.
    # TODO(synk): support diffY != 0 (asymmetric pad of the upsampled signal).
    assert N2 == N and L2 == 2 * L1, "Up1D needs x2.size(2) == 2 * x1.size(2)"
    Cc = C2 + Co
    assert p["w1"].shape == (Co, Cc, 3) and p["wt"].shape[0] == Cin
    f32, bf = jnp.float32, MATMUL_DTYPE

    # ---- parameter-side prep only (tiny arrays; no activation round trips) ----
    wup = jnp.transpose(p["wt"], (2, 1, 0)).astype(bf)              # (2, Co, Cin)
    col = lambda v: v.astype(f32).reshape(-1, 1)                    # (Co, 1)
    # 0/1 scatter matrices for the even/odd lane interleave of the upsample.
    m = jnp.arange(L1)
    s_even = jnp.zeros((L1, L2), f32).at[m, 2 * m].set(1.0)
    s_odd = jnp.zeros((L1, L2), f32).at[m, 2 * m + 1].set(1.0)
    # Conv taps, tap-major; conv1 split into skip / up channel column blocks.
    w1s = jnp.transpose(p["w1"][:, :C2, :], (2, 0, 1)).astype(bf)   # (3, Co, C2)
    w1u = jnp.transpose(p["w1"][:, C2:, :], (2, 0, 1)).astype(bf)   # (3, Co, Co)
    w2 = jnp.transpose(p["w2"], (2, 0, 1)).astype(bf)               # (3, Co, Co)

    # ---- grid: (phase, batch); both sequential (BN stats carry across batch).
    # TODO(synk): on v7x mark the batch axis "parallel" across the 2 TensorCores
    # and add a cross-core reduction of the BN sum/sumsq partials.
    grid = (3, N)

    def x_map(ph, n):       # stream x1/x2 only during phase 0, pin afterwards
        return (jnp.where(ph == 0, n, N - 1), 0, 0)

    def o_map(ph, n):       # output block only advances during phase 2
        return (jnp.where(ph == 2, n, 0), 0, 0)

    def full_spec(a):       # whole-array VMEM operand, resident across the grid
        nd = a.ndim
        return pl.BlockSpec(a.shape, lambda *_, _nd=nd: (0,) * _nd)

    weights = (s_even, s_odd, wup, col(p["bt"]), w1s, w1u,
               col(p["g1"]), col(p["beta1"]), w2, col(p["g2"]), col(p["beta2"]))
    in_specs = ([pl.BlockSpec((None, Cin, L1), x_map),
                 pl.BlockSpec((None, C2, L2), x_map)]
                + [full_spec(w) for w in weights])

    # VMEM budget: persistent (N, Co, L2) f32 activation scratch + double-buffered
    # per-batch i/o blocks + constants; sized for the smallest-VMEM target (v7x).
    pad = lambda r, c: ((r + 7) // 8 * 8) * ((c + 127) // 128 * 128)
    vmem_bytes = (4 * N * pad(Co, L2)                                # h scratch
                  + 2 * 2 * 4 * (pad(Cin, L1) + pad(C2, L2) + pad(Co, L2))
                  + 2 * 4 * pad(L1, L2)                              # scatter mats
                  + 16 * 4 * pad(8, L2))                             # temporaries
    vmem_limit = int(min(64 << 20, max(32 << 20, 2 * vmem_bytes)))

    flops = 2 * N * L2 * Co * (Cin + 2 * L1 + 3 * Cc + 3 * Co)
    bytes_accessed = 4 * (N * (Cin * L1 + C2 * L2 + Co * L2)
                          + 2 * L1 * L2 + 16 * Co * Cc)

    # TODO(synk): store the intermediate scratch in bf16 (and/or emit a bf16
    # output) to halve the VMEM/writeback footprint if the consumer allows it.
    out = pl.pallas_call(
        functools.partial(_up1d_kernel, N=N, L2=L2),
        out_shape=jax.ShapeDtypeStruct((N, Co, L2), f32),
        grid=grid,
        in_specs=in_specs,
        out_specs=pl.BlockSpec((None, Co, L2), o_map),
        scratch_shapes=[pltpu.VMEM((N, Co, L2), f32),     # pre-BN conv activations
                        pltpu.VMEM((Co, 1), f32), pltpu.VMEM((Co, 1), f32),
                        pltpu.VMEM((Co, 1), f32), pltpu.VMEM((Co, 1), f32)],
        compiler_params=pltpu.CompilerParams(
            dimension_semantics=("arbitrary", "arbitrary"),
            vmem_limit_bytes=vmem_limit),
        cost_estimate=pl.CostEstimate(flops=flops, transcendentals=0,
                                      bytes_accessed=bytes_accessed),
    )(x1_ncl.astype(f32), x2_ncl.astype(f32), *weights)
    return out


def _ref_forward(x1_ncl, x2_ncl, p):
    """Plain-JAX reference (PyTorch training-mode semantics).

    Matmul operands are cast to MATMUL_DTYPE to mirror the kernel's MXU dtype
    policy; BN statistics / normalisation stay f32.  Conv biases are included
    here (as in PyTorch) - they cancel through BatchNorm, matching the kernel.
    """
    f32, bf = jnp.float32, MATMUL_DTYPE
    x1 = jnp.transpose(x1_ncl.astype(f32), (0, 2, 1))                # (N, L1, Cin)
    x2 = jnp.transpose(x2_ncl.astype(f32), (0, 2, 1))                # (N, L2, C2)
    N, L1, Cin = x1.shape
    Co = p["wt"].shape[1]

    def mm(a, b):
        return jnp.dot(a.astype(bf), b.astype(bf), preferred_element_type=f32)

    # ConvTranspose1d(k=2, s=2)
    x1f = x1.reshape(N * L1, Cin)
    up = jnp.stack([mm(x1f, p["wt"][:, :, 0]) + p["bt"],
                    mm(x1f, p["wt"][:, :, 1]) + p["bt"]], axis=1)
    up = up.reshape(N, 2 * L1, Co)
    x = jnp.concatenate([x2, up], axis=-1)                           # (N, L2, Cc)

    def conv3(x, w, b):                                              # k=3, pad=1
        Nb, L, C = x.shape
        xp = jnp.pad(x, ((0, 0), (1, 1), (0, 0)))
        h = sum(mm(xp[:, t:t + L, :].reshape(Nb * L, C), w[:, :, t].T)
                for t in range(3)) + b
        return h.reshape(Nb, L, -1)

    def bn_relu(y, g, be):                                           # train-mode BN
        mu = jnp.mean(y, axis=(0, 1), keepdims=True)
        var = jnp.mean(jnp.square(y - mu), axis=(0, 1), keepdims=True)
        return jnp.maximum((y - mu) * jax.lax.rsqrt(var + _EPS) * g + be, 0.0)

    h = bn_relu(conv3(x, p["w1"], p["b1"]), p["g1"], p["beta1"])
    out = bn_relu(conv3(h, p["w2"], p["b2"]), p["g2"], p["beta2"])
    return jnp.transpose(out, (0, 2, 1))


if __name__ == "__main__":
    # Up1D(in_channels=8, out_channels=4); skip connection has Cin - Co channels.
    N, Cin, Co, L1 = 2, 8, 4, 64
    C2, L2 = Cin - Co, 2 * L1

    key = jax.random.PRNGKey(0)
    ks = jax.random.split(key, 12)
    x1 = jax.random.normal(ks[0], (N, Cin, L1), jnp.float32)     # deep features (NCL)
    x2 = jax.random.normal(ks[1], (N, C2, L2), jnp.float32)      # skip connection (NCL)

    params = dict(
        wt=0.2 * jax.random.normal(ks[2], (Cin, Co, 2), jnp.float32),   # ConvTranspose1d
        bt=0.1 * jax.random.normal(ks[3], (Co,), jnp.float32),
        w1=0.2 * jax.random.normal(ks[4], (Co, Cin, 3), jnp.float32),   # Conv1d #1
        b1=0.1 * jax.random.normal(ks[5], (Co,), jnp.float32),
        g1=1.0 + 0.1 * jax.random.normal(ks[6], (Co,), jnp.float32),    # BN1 gamma/beta
        beta1=0.1 * jax.random.normal(ks[7], (Co,), jnp.float32),
        w2=0.2 * jax.random.normal(ks[8], (Co, Co, 3), jnp.float32),    # Conv1d #2
        b2=0.1 * jax.random.normal(ks[9], (Co,), jnp.float32),
        g2=1.0 + 0.1 * jax.random.normal(ks[10], (Co,), jnp.float32),   # BN2 gamma/beta
        beta2=0.1 * jax.random.normal(ks[11], (Co,), jnp.float32),
    )

    out = jax.block_until_ready(jax.jit(up1d_forward)(x1, x2, params))
    ref = jax.block_until_ready(jax.jit(_ref_forward)(x1, x2, params))

    assert out.shape == (N, Co, L2), out.shape
    err = float(jnp.max(jnp.abs(out - ref)))
    if err > 5e-3:   # margin for bf16 matmul-operand rounding / accumulation order
        raise AssertionError(f"Pallas kernel mismatch vs reference, max abs err = {err}")
    print("KERNEL_OK")
</pallas_src>

<mosaic_0001>
module attributes {stable_mosaic.version = 11 : i64} {
  func.func @_up1d_kernel(%arg0: i32, %arg1: i32, %arg2: memref<1x8x64xf32, #tpu.memory_space<vmem>>, %arg3: memref<1x4x128xf32, #tpu.memory_space<vmem>>, %arg4: memref<64x128xf32, #tpu.memory_space<vmem>>, %arg5: memref<64x128xf32, #tpu.memory_space<vmem>>, %arg6: memref<2x4x8xbf16, #tpu.memory_space<vmem>>, %arg7: memref<4x1xf32, #tpu.memory_space<vmem>>, %arg8: memref<3x4x4xbf16, #tpu.memory_space<vmem>>, %arg9: memref<3x4x4xbf16, #tpu.memory_space<vmem>>, %arg10: memref<4x1xf32, #tpu.memory_space<vmem>>, %arg11: memref<4x1xf32, #tpu.memory_space<vmem>>, %arg12: memref<3x4x4xbf16, #tpu.memory_space<vmem>>, %arg13: memref<4x1xf32, #tpu.memory_space<vmem>>, %arg14: memref<4x1xf32, #tpu.memory_space<vmem>>, %arg15: memref<1x4x128xf32, #tpu.memory_space<vmem>>, %arg16: memref<2x4x128xf32, #tpu.memory_space<vmem>>, %arg17: memref<4x1xf32, #tpu.memory_space<vmem>>, %arg18: memref<4x1xf32, #tpu.memory_space<vmem>>, %arg19: memref<4x1xf32, #tpu.memory_space<vmem>>, %arg20: memref<4x1xf32, #tpu.memory_space<vmem>>) attributes {dimension_semantics = [#tpu.dimension_semantics<arbitrary>, #tpu.dimension_semantics<arbitrary>], iteration_bounds = array<i64: 3, 2>, scalar_prefetch = 0 : i64, scratch_operands = 5 : i64, tpu.core_type = #tpu.core_type<tc>, window_params = [{transform_indices = @transform_0, window_bounds = array<i64: 1, 8, 64>}, {transform_indices = @transform_1, window_bounds = array<i64: 1, 4, 128>}, {pipeline_mode = #tpu.pipeline_mode<synchronous>, transform_indices = @transform_2, window_bounds = array<i64: 64, 128>}, {pipeline_mode = #tpu.pipeline_mode<synchronous>, transform_indices = @transform_3, window_bounds = array<i64: 64, 128>}, {pipeline_mode = #tpu.pipeline_mode<synchronous>, transform_indices = @transform_4, window_bounds = array<i64: 2, 4, 8>}, {pipeline_mode = #tpu.pipeline_mode<synchronous>, transform_indices = @transform_5, window_bounds = array<i64: 4, 1>}, {pipeline_mode = #tpu.pipeline_mode<synchronous>, transform_indices = @transform_6, window_bounds = array<i64: 3, 4, 4>}, {pipeline_mode = #tpu.pipeline_mode<synchronous>, transform_indices = @transform_7, window_bounds = array<i64: 3, 4, 4>}, {pipeline_mode = #tpu.pipeline_mode<synchronous>, transform_indices = @transform_8, window_bounds = array<i64: 4, 1>}, {pipeline_mode = #tpu.pipeline_mode<synchronous>, transform_indices = @transform_9, window_bounds = array<i64: 4, 1>}, {pipeline_mode = #tpu.pipeline_mode<synchronous>, transform_indices = @transform_10, window_bounds = array<i64: 3, 4, 4>}, {pipeline_mode = #tpu.pipeline_mode<synchronous>, transform_indices = @transform_11, window_bounds = array<i64: 4, 1>}, {pipeline_mode = #tpu.pipeline_mode<synchronous>, transform_indices = @transform_12, window_bounds = array<i64: 4, 1>}, {transform_indices = @transform_13, window_bounds = array<i64: 1, 4, 128>}]} {
    %0 = tpu.iota {dimensions = array<i32: 1>} : vector<1x128xi32>
    %c0_i32 = arith.constant 0 : i32
    %1 = vector.broadcast %c0_i32 : i32 to vector<1x128xi32>
    %2 = arith.cmpi sgt, %0, %1 : vector<1x128xi32>
    %c127_i32 = arith.constant 127 : i32
    %3 = vector.broadcast %c127_i32 : i32 to vector<1x128xi32>
    %4 = arith.cmpi slt, %0, %3 : vector<1x128xi32>
    %c0_i32_0 = arith.constant 0 : i32
    %5 = arith.cmpi eq, %arg0, %c0_i32_0 : i32
    %6 = arith.extui %5 : i1 to i32
    %c0_i32_1 = arith.constant 0 : i32
    %7 = arith.cmpi ne, %6, %c0_i32_1 : i32
    scf.if %7 {
      %c0 = arith.constant 0 : index
      %c0_5 = arith.constant 0 : index
      %c0_6 = arith.constant 0 : index
      %14 = vector.load %arg2[%c0, %c0_5, %c0_6] : memref<1x8x64xf32, #tpu.memory_space<vmem>>, vector<1x8x64xf32>
      %15 = vector.shape_cast %14 : vector<1x8x64xf32> to vector<8x64xf32>
      %16 = arith.truncf %15 : vector<8x64xf32> to vector<8x64xbf16>
      %c0_7 = arith.constant 0 : index
      %c0_8 = arith.constant 0 : index
      %c0_9 = arith.constant 0 : index
      %17 = vector.load %arg3[%c0_7, %c0_8, %c0_9] : memref<1x4x128xf32, #tpu.memory_space<vmem>>, vector<1x4x128xf32>
      %18 = vector.shape_cast %17 : vector<1x4x128xf32> to vector<4x128xf32>
      %19 = arith.truncf %18 : vector<4x128xf32> to vector<4x128xbf16>
      %c0_10 = arith.constant 0 : index
      %c0_11 = arith.constant 0 : index
      %c0_12 = arith.constant 0 : index
      %20 = vector.load %arg6[%c0_10, %c0_11, %c0_12] : memref<2x4x8xbf16, #tpu.memory_space<vmem>>, vector<1x4x8xbf16>
      %21 = vector.shape_cast %20 : vector<1x4x8xbf16> to vector<4x8xbf16>
      %cst_13 = arith.constant dense<0.000000e+00> : vector<4x64xf32>
      %22 = tpu.matmul %21, %16, %cst_13 {dimension_numbers = #tpu.dot_dimension_numbers<[1], [0], [0], [1], [0, 0, 1, 1], [], []>} : vector<4x8xbf16>, vector<8x64xbf16>, vector<4x64xf32> -> vector<4x64xf32>
      %c1 = arith.constant 1 : index
      %c0_14 = arith.constant 0 : index
      %c0_15 = arith.constant 0 : index
      %23 = vector.load %arg6[%c1, %c0_14, %c0_15] : memref<2x4x8xbf16, #tpu.memory_space<vmem>>, vector<1x4x8xbf16>
      %24 = vector.shape_cast %23 : vector<1x4x8xbf16> to vector<4x8xbf16>
      %cst_16 = arith.constant dense<0.000000e+00> : vector<4x64xf32>
      %25 = tpu.matmul %24, %16, %cst_16 {dimension_numbers = #tpu.dot_dimension_numbers<[1], [0], [0], [1], [0, 0, 1, 1], [], []>} : vector<4x8xbf16>, vector<8x64xbf16>, vector<4x64xf32> -> vector<4x64xf32>
      %c0_17 = arith.constant 0 : index
      %c0_18 = arith.constant 0 : index
      %26 = vector.load %arg4[%c0_17, %c0_18] : memref<64x128xf32, #tpu.memory_space<vmem>>, vector<64x128xf32>
      %cst_19 = arith.constant dense<0.000000e+00> : vector<4x128xf32>
      %27 = tpu.matmul %22, %26, %cst_19 {dimension_numbers = #tpu.dot_dimension_numbers<[1], [0], [0], [1], [0, 0, 1, 1], [], []>} : vector<4x64xf32>, vector<64x128xf32>, vector<4x128xf32> -> vector<4x128xf32>
      %c0_20 = arith.constant 0 : index
      %c0_21 = arith.constant 0 : index
      %28 = vector.load %arg5[%c0_20, %c0_21] : memref<64x128xf32, #tpu.memory_space<vmem>>, vector<64x128xf32>
      %cst_22 = arith.constant dense<0.000000e+00> : vector<4x128xf32>
      %29 = tpu.matmul %25, %28, %cst_22 {dimension_numbers = #tpu.dot_dimension_numbers<[1], [0], [0], [1], [0, 0, 1, 1], [], []>} : vector<4x64xf32>, vector<64x128xf32>, vector<4x128xf32> -> vector<4x128xf32>
      %30 = arith.addf %27, %29 : vector<4x128xf32>
      %c0_23 = arith.constant 0 : index
      %c0_24 = arith.constant 0 : index
      %31 = vector.load %arg7[%c0_23, %c0_24] : memref<4x1xf32, #tpu.memory_space<vmem>>, vector<4x1xf32>
      %32 = vector.broadcast %31 : vector<4x1xf32> to vector<4x128xf32>
      %33 = arith.addf %30, %32 : vector<4x128xf32>
      %34 = arith.truncf %33 : vector<4x128xf32> to vector<4x128xbf16>
      %c0_25 = arith.constant 0 : index
      %c0_26 = arith.constant 0 : index
      %c0_27 = arith.constant 0 : index
      %35 = vector.load %arg8[%c0_25, %c0_26, %c0_27] : memref<3x4x4xbf16, #tpu.memory_space<vmem>>, vector<1x4x4xbf16>
      %36 = vector.shape_cast %35 : vector<1x4x4xbf16> to vector<4x4xbf16>
      %cst_28 = arith.constant dense<0.000000e+00> : vector<4x128xf32>
      %37 = tpu.matmul %36, %19, %cst_28 {dimension_numbers = #tpu.dot_dimension_numbers<[1], [0], [0], [1], [0, 0, 1, 1], [], []>} : vector<4x4xbf16>, vector<4x128xbf16>, vector<4x128xf32> -> vector<4x128xf32>
      %c0_29 = arith.constant 0 : index
      %c0_30 = arith.constant 0 : index
      %c0_31 = arith.constant 0 : index
      %38 = vector.load %arg9[%c0_29, %c0_30, %c0_31] : memref<3x4x4xbf16, #tpu.memory_space<vmem>>, vector<1x4x4xbf16>
      %39 = vector.shape_cast %38 : vector<1x4x4xbf16> to vector<4x4xbf16>
      %cst_32 = arith.constant dense<0.000000e+00> : vector<4x128xf32>
      %40 = tpu.matmul %39, %34, %cst_32 {dimension_numbers = #tpu.dot_dimension_numbers<[1], [0], [0], [1], [0, 0, 1, 1], [], []>} : vector<4x4xbf16>, vector<4x128xbf16>, vector<4x128xf32> -> vector<4x128xf32>
      %41 = arith.addf %37, %40 : vector<4x128xf32>
      %c1_33 = arith.constant 1 : index
      %c0_34 = arith.constant 0 : index
      %c0_35 = arith.constant 0 : index
      %42 = vector.load %arg8[%c1_33, %c0_34, %c0_35] : memref<3x4x4xbf16, #tpu.memory_space<vmem>>, vector<1x4x4xbf16>
      %43 = vector.shape_cast %42 : vector<1x4x4xbf16> to vector<4x4xbf16>
      %cst_36 = arith.constant dense<0.000000e+00> : vector<4x128xf32>
      %44 = tpu.matmul %43, %19, %cst_36 {dimension_numbers = #tpu.dot_dimension_numbers<[1], [0], [0], [1], [0, 0, 1, 1], [], []>} : vector<4x4xbf16>, vector<4x128xbf16>, vector<4x128xf32> -> vector<4x128xf32>
      %c1_37 = arith.constant 1 : index
      %c0_38 = arith.constant 0 : index
      %c0_39 = arith.constant 0 : index
      %45 = vector.load %arg9[%c1_37, %c0_38, %c0_39] : memref<3x4x4xbf16, #tpu.memory_space<vmem>>, vector<1x4x4xbf16>
      %46 = vector.shape_cast %45 : vector<1x4x4xbf16> to vector<4x4xbf16>
      %cst_40 = arith.constant dense<0.000000e+00> : vector<4x128xf32>
      %47 = tpu.matmul %46, %34, %cst_40 {dimension_numbers = #tpu.dot_dimension_numbers<[1], [0], [0], [1], [0, 0, 1, 1], [], []>} : vector<4x4xbf16>, vector<4x128xbf16>, vector<4x128xf32> -> vector<4x128xf32>
      %48 = arith.addf %44, %47 : vector<4x128xf32>
      %c2 = arith.constant 2 : index
      %c0_41 = arith.constant 0 : index
      %c0_42 = arith.constant 0 : index
      %49 = vector.load %arg8[%c2, %c0_41, %c0_42] : memref<3x4x4xbf16, #tpu.memory_space<vmem>>, vector<1x4x4xbf16>
      %50 = vector.shape_cast %49 : vector<1x4x4xbf16> to vector<4x4xbf16>
      %cst_43 = arith.constant dense<0.000000e+00> : vector<4x128xf32>
      %51 = tpu.matmul %50, %19, %cst_43 {dimension_numbers = #tpu.dot_dimension_numbers<[1], [0], [0], [1], [0, 0, 1, 1], [], []>} : vector<4x4xbf16>, vector<4x128xbf16>, vector<4x128xf32> -> vector<4x128xf32>
      %c2_44 = arith.constant 2 : index
      %c0_45 = arith.constant 0 : index
      %c0_46 = arith.constant 0 : index
      %52 = vector.load %arg9[%c2_44, %c0_45, %c0_46] : memref<3x4x4xbf16, #tpu.memory_space<vmem>>, vector<1x4x4xbf16>
      %53 = vector.shape_cast %52 : vector<1x4x4xbf16> to vector<4x4xbf16>
      %cst_47 = arith.constant dense<0.000000e+00> : vector<4x128xf32>
      %54 = tpu.matmul %53, %34, %cst_47 {dimension_numbers = #tpu.dot_dimension_numbers<[1], [0], [0], [1], [0, 0, 1, 1], [], []>} : vector<4x4xbf16>, vector<4x128xbf16>, vector<4x128xf32> -> vector<4x128xf32>
      %55 = arith.addf %51, %54 : vector<4x128xf32>
      %c1_i32_48 = arith.constant 1 : i32
      %56 = tpu.dynamic_rotate %41 by %c1_i32_48 dim 1 : vector<4x128xf32>, i32 -> vector<4x128xf32>
      %cst_49 = arith.constant 0.000000e+00 : f32
      %57 = vector.shape_cast %2 : vector<1x128xi1> to vector<1x128xi1>
      %58 = vector.broadcast %57 : vector<1x128xi1> to vector<4x128xi1>
      %59 = vector.broadcast %cst_49 : f32 to vector<4x128xf32>
      %60 = arith.select %58, %56, %59 : vector<4x128xi1>, vector<4x128xf32>
      %61 = arith.addf %48, %60 : vector<4x128xf32>
      %c127_i32_50 = arith.constant 127 : i32
      %62 = tpu.dynamic_rotate %55 by %c127_i32_50 dim 1 : vector<4x128xf32>, i32 -> vector<4x128xf32>
      %cst_51 = arith.constant 0.000000e+00 : f32
      %63 = vector.shape_cast %4 : vector<1x128xi1> to vector<1x128xi1>
      %64 = vector.broadcast %63 : vector<1x128xi1> to vector<4x128xi1>
      %65 = vector.broadcast %cst_51 : f32 to vector<4x128xf32>
      %66 = arith.select %64, %62, %65 : vector<4x128xi1>, vector<4x128xf32>
      %67 = arith.addf %61, %66 : vector<4x128xf32>
      %68 = arith.index_cast %arg1 : i32 to index
      %c0_52 = arith.constant 0 : index
      %c0_53 = arith.constant 0 : index
      %69 = vector.load %arg16[%68, %c0_52, %c0_53] : memref<2x4x128xf32, #tpu.memory_space<vmem>>, vector<1x4x128xf32>
      %70 = vector.shape_cast %69 : vector<1x4x128xf32> to vector<4x128xf32>
      %71 = vector.shape_cast %67 : vector<4x128xf32> to vector<1x4x128xf32>
      tpu.vector_store %arg16[%68, %c0_52, %c0_53], %71 {strides = array<i32>} : memref<2x4x128xf32, #tpu.memory_space<vmem>>, vector<1x4x128xf32>,
      %c0_i32_54 = arith.constant 0 : i32
      %72 = arith.cmpi eq, %arg1, %c0_i32_54 : i32
      %73 = arith.extui %72 : i1 to i32
      %c0_i32_55 = arith.constant 0 : i32
      %74 = arith.cmpi ne, %73, %c0_i32_55 : i32
      scf.if %74 {
        %cst_66 = arith.constant 0.000000e+00 : f32
        %86 = vector.broadcast %cst_66 : f32 to vector<4x1xf32>
        %c0_67 = arith.constant 0 : index
        %c0_68 = arith.constant 0 : index
        %87 = vector.load %arg17[%c0_67, %c0_68] : memref<4x1xf32, #tpu.memory_space<vmem>>, vector<4x1xf32>
        tpu.vector_store %arg17[%c0_67, %c0_68], %86 {strides = array<i32>} : memref<4x1xf32, #tpu.memory_space<vmem>>, vector<4x1xf32>,
        %cst_69 = arith.constant 0.000000e+00 : f32
        %88 = vector.broadcast %cst_69 : f32 to vector<4x1xf32>
        %c0_70 = arith.constant 0 : index
        %c0_71 = arith.constant 0 : index
        %89 = vector.load %arg18[%c0_70, %c0_71] : memref<4x1xf32, #tpu.memory_space<vmem>>, vector<4x1xf32>
        tpu.vector_store %arg18[%c0_70, %c0_71], %88 {strides = array<i32>} : memref<4x1xf32, #tpu.memory_space<vmem>>, vector<4x1xf32>,
      } else {
      }
      %c0_56 = arith.constant 0 : index
      %c0_57 = arith.constant 0 : index
      %75 = vector.load %arg17[%c0_56, %c0_57] : memref<4x1xf32, #tpu.memory_space<vmem>>, vector<4x1xf32>
      %cst_58 = arith.constant dense<0.000000e+00> : vector<4xf32>
      %76 = vector.multi_reduction <add>, %67, %cst_58 [1] : vector<4x128xf32> to vector<4xf32>
      %77 = vector.shape_cast %76 : vector<4xf32> to vector<4x1xf32>
      %78 = arith.addf %75, %77 : vector<4x1xf32>
      %c0_59 = arith.constant 0 : index
      %c0_60 = arith.constant 0 : index
      %79 = vector.load %arg17[%c0_59, %c0_60] : memref<4x1xf32, #tpu.memory_space<vmem>>, vector<4x1xf32>
      tpu.vector_store %arg17[%c0_59, %c0_60], %78 {strides = array<i32>} : memref<4x1xf32, #tpu.memory_space<vmem>>, vector<4x1xf32>,
      %c0_61 = arith.constant 0 : index
      %c0_62 = arith.constant 0 : index
      %80 = vector.load %arg18[%c0_61, %c0_62] : memref<4x1xf32, #tpu.memory_space<vmem>>, vector<4x1xf32>
      %81 = arith.mulf %67, %67 : vector<4x128xf32>
      %cst_63 = arith.constant dense<0.000000e+00> : vector<4xf32>
      %82 = vector.multi_reduction <add>, %81, %cst_63 [1] : vector<4x128xf32> to vector<4xf32>
      %83 = vector.shape_cast %82 : vector<4xf32> to vector<4x1xf32>
      %84 = arith.addf %80, %83 : vector<4x1xf32>
      %c0_64 = arith.constant 0 : index
      %c0_65 = arith.constant 0 : index
      %85 = vector.load %arg18[%c0_64, %c0_65] : memref<4x1xf32, #tpu.memory_space<vmem>>, vector<4x1xf32>
      tpu.vector_store %arg18[%c0_64, %c0_65], %84 {strides = array<i32>} : memref<4x1xf32, #tpu.memory_space<vmem>>, vector<4x1xf32>,
    } else {
    }
    %c1_i32 = arith.constant 1 : i32
    %8 = arith.cmpi eq, %arg0, %c1_i32 : i32
    %9 = arith.extui %8 : i1 to i32
    %cst = arith.constant 2.560000e+02 : f32
    %c0_i32_2 = arith.constant 0 : i32
    %10 = arith.cmpi ne, %9, %c0_i32_2 : i32
    scf.if %10 {
      %14 = arith.index_cast %arg1 : i32 to index
      %c0 = arith.constant 0 : index
      %c0_5 = arith.constant 0 : index
      %15 = vector.load %arg16[%14, %c0, %c0_5] : memref<2x4x128xf32, #tpu.memory_space<vmem>>, vector<1x4x128xf32>
      %16 = vector.shape_cast %15 : vector<1x4x128xf32> to vector<4x128xf32>
      %c0_6 = arith.constant 0 : index
      %c0_7 = arith.constant 0 : index
      %17 = vector.load %arg17[%c0_6, %c0_7] : memref<4x1xf32, #tpu.memory_space<vmem>>, vector<4x1xf32>
      %18 = vector.broadcast %cst : f32 to vector<4x1xf32>
      %19 = arith.divf %17, %18 : vector<4x1xf32>
      %c0_8 = arith.constant 0 : index
      %c0_9 = arith.constant 0 : index
      %20 = vector.load %arg18[%c0_8, %c0_9] : memref<4x1xf32, #tpu.memory_space<vmem>>, vector<4x1xf32>
      %21 = vector.broadcast %cst : f32 to vector<4x1xf32>
      %22 = arith.divf %20, %21 : vector<4x1xf32>
      %23 = arith.mulf %19, %19 : vector<4x1xf32>
      %24 = arith.subf %22, %23 : vector<4x1xf32>
      %c0_10 = arith.constant 0 : index
      %c0_11 = arith.constant 0 : index
      %25 = vector.load %arg10[%c0_10, %c0_11] : memref<4x1xf32, #tpu.memory_space<vmem>>, vector<4x1xf32>
      %cst_12 = arith.constant 9.99999974E-6 : f32
      %26 = vector.broadcast %cst_12 : f32 to vector<4x1xf32>
      %27 = arith.addf %24, %26 : vector<4x1xf32>
      %28 = math.rsqrt %27 : vector<4x1xf32>
      %29 = arith.mulf %25, %28 : vector<4x1xf32>
      %c0_13 = arith.constant 0 : index
      %c0_14 = arith.constant 0 : index
      %30 = vector.load %arg11[%c0_13, %c0_14] : memref<4x1xf32, #tpu.memory_space<vmem>>, vector<4x1xf32>
      %31 = arith.mulf %19, %29 : vector<4x1xf32>
      %32 = arith.subf %30, %31 : vector<4x1xf32>
      %33 = vector.broadcast %29 : vector<4x1xf32> to vector<4x128xf32>
      %34 = arith.mulf %16, %33 : vector<4x128xf32>
      %35 = vector.broadcast %32 : vector<4x1xf32> to vector<4x128xf32>
      %36 = arith.addf %34, %35 : vector<4x128xf32>
      %cst_15 = arith.constant 0.000000e+00 : f32
      %37 = vector.broadcast %cst_15 : f32 to vector<4x128xf32>
      %38 = arith.maximumf %36, %37 : vector<4x128xf32>
      %39 = arith.truncf %38 : vector<4x128xf32> to vector<4x128xbf16>
      %c0_16 = arith.constant 0 : index
      %c0_17 = arith.constant 0 : index
      %c0_18 = arith.constant 0 : index
      %40 = vector.load %arg12[%c0_16, %c0_17, %c0_18] : memref<3x4x4xbf16, #tpu.memory_space<vmem>>, vector<1x4x4xbf16>
      %41 = vector.shape_cast %40 : vector<1x4x4xbf16> to vector<4x4xbf16>
      %cst_19 = arith.constant dense<0.000000e+00> : vector<4x128xf32>
      %42 = tpu.matmul %41, %39, %cst_19 {dimension_numbers = #tpu.dot_dimension_numbers<[1], [0], [0], [1], [0, 0, 1, 1], [], []>} : vector<4x4xbf16>, vector<4x128xbf16>, vector<4x128xf32> -> vector<4x128xf32>
      %c1 = arith.constant 1 : index
      %c0_20 = arith.constant 0 : index
      %c0_21 = arith.constant 0 : index
      %43 = vector.load %arg12[%c1, %c0_20, %c0_21] : memref<3x4x4xbf16, #tpu.memory_space<vmem>>, vector<1x4x4xbf16>
      %44 = vector.shape_cast %43 : vector<1x4x4xbf16> to vector<4x4xbf16>
      %cst_22 = arith.constant dense<0.000000e+00> : vector<4x128xf32>
      %45 = tpu.matmul %44, %39, %cst_22 {dimension_numbers = #tpu.dot_dimension_numbers<[1], [0], [0], [1], [0, 0, 1, 1], [], []>} : vector<4x4xbf16>, vector<4x128xbf16>, vector<4x128xf32> -> vector<4x128xf32>
      %c2 = arith.constant 2 : index
      %c0_23 = arith.constant 0 : index
      %c0_24 = arith.constant 0 : index
      %46 = vector.load %arg12[%c2, %c0_23, %c0_24] : memref<3x4x4xbf16, #tpu.memory_space<vmem>>, vector<1x4x4xbf16>
      %47 = vector.shape_cast %46 : vector<1x4x4xbf16> to vector<4x4xbf16>
      %cst_25 = arith.constant dense<0.000000e+00> : vector<4x128xf32>
      %48 = tpu.matmul %47, %39, %cst_25 {dimension_numbers = #tpu.dot_dimension_numbers<[1], [0], [0], [1], [0, 0, 1, 1], [], []>} : vector<4x4xbf16>, vector<4x128xbf16>, vector<4x128xf32> -> vector<4x128xf32>
      %c1_i32_26 = arith.constant 1 : i32
      %49 = tpu.dynamic_rotate %42 by %c1_i32_26 dim 1 : vector<4x128xf32>, i32 -> vector<4x128xf32>
      %cst_27 = arith.constant 0.000000e+00 : f32
      %50 = vector.shape_cast %2 : vector<1x128xi1> to vector<1x128xi1>
      %51 = vector.broadcast %50 : vector<1x128xi1> to vector<4x128xi1>
      %52 = vector.broadcast %cst_27 : f32 to vector<4x128xf32>
      %53 = arith.select %51, %49, %52 : vector<4x128xi1>, vector<4x128xf32>
      %54 = arith.addf %45, %53 : vector<4x128xf32>
      %c127_i32_28 = arith.constant 127 : i32
      %55 = tpu.dynamic_rotate %48 by %c127_i32_28 dim 1 : vector<4x128xf32>, i32 -> vector<4x128xf32>
      %cst_29 = arith.constant 0.000000e+00 : f32
      %56 = vector.shape_cast %4 : vector<1x128xi1> to vector<1x128xi1>
      %57 = vector.broadcast %56 : vector<1x128xi1> to vector<4x128xi1>
      %58 = vector.broadcast %cst_29 : f32 to vector<4x128xf32>
      %59 = arith.select %57, %55, %58 : vector<4x128xi1>, vector<4x128xf32>
      %60 = arith.addf %54, %59 : vector<4x128xf32>
      %61 = arith.index_cast %arg1 : i32 to index
      %c0_30 = arith.constant 0 : index
      %c0_31 = arith.constant 0 : index
      %62 = vector.load %arg16[%61, %c0_30, %c0_31] : memref<2x4x128xf32, #tpu.memory_space<vmem>>, vector<1x4x128xf32>
      %63 = vector.shape_cast %62 : vector<1x4x128xf32> to vector<4x128xf32>
      %64 = vector.shape_cast %60 : vector<4x128xf32> to vector<1x4x128xf32>
      tpu.vector_store %arg16[%61, %c0_30, %c0_31], %64 {strides = array<i32>} : memref<2x4x128xf32, #tpu.memory_space<vmem>>, vector<1x4x128xf32>,
      %c0_i32_32 = arith.constant 0 : i32
      %65 = arith.cmpi eq, %arg1, %c0_i32_32 : i32
      %66 = arith.extui %65 : i1 to i32
      %c0_i32_33 = arith.constant 0 : i32
      %67 = arith.cmpi ne, %66, %c0_i32_33 : i32
      scf.if %67 {
        %cst_44 = arith.constant 0.000000e+00 : f32
        %79 = vector.broadcast %cst_44 : f32 to vector<4x1xf32>
        %c0_45 = arith.constant 0 : index
        %c0_46 = arith.constant 0 : index
        %80 = vector.load %arg19[%c0_45, %c0_46] : memref<4x1xf32, #tpu.memory_space<vmem>>, vector<4x1xf32>
        tpu.vector_store %arg19[%c0_45, %c0_46], %79 {strides = array<i32>} : memref<4x1xf32, #tpu.memory_space<vmem>>, vector<4x1xf32>,
        %cst_47 = arith.constant 0.000000e+00 : f32
        %81 = vector.broadcast %cst_47 : f32 to vector<4x1xf32>
        %c0_48 = arith.constant 0 : index
        %c0_49 = arith.constant 0 : index
        %82 = vector.load %arg20[%c0_48, %c0_49] : memref<4x1xf32, #tpu.memory_space<vmem>>, vector<4x1xf32>
        tpu.vector_store %arg20[%c0_48, %c0_49], %81 {strides = array<i32>} : memref<4x1xf32, #tpu.memory_space<vmem>>, vector<4x1xf32>,
      } else {
      }
      %c0_34 = arith.constant 0 : index
      %c0_35 = arith.constant 0 : index
      %68 = vector.load %arg19[%c0_34, %c0_35] : memref<4x1xf32, #tpu.memory_space<vmem>>, vector<4x1xf32>
      %cst_36 = arith.constant dense<0.000000e+00> : vector<4xf32>
      %69 = vector.multi_reduction <add>, %60, %cst_36 [1] : vector<4x128xf32> to vector<4xf32>
      %70 = vector.shape_cast %69 : vector<4xf32> to vector<4x1xf32>
      %71 = arith.addf %68, %70 : vector<4x1xf32>
      %c0_37 = arith.constant 0 : index
      %c0_38 = arith.constant 0 : index
      %72 = vector.load %arg19[%c0_37, %c0_38] : memref<4x1xf32, #tpu.memory_space<vmem>>, vector<4x1xf32>
      tpu.vector_store %arg19[%c0_37, %c0_38], %71 {strides = array<i32>} : memref<4x1xf32, #tpu.memory_space<vmem>>, vector<4x1xf32>,
      %c0_39 = arith.constant 0 : index
      %c0_40 = arith.constant 0 : index
      %73 = vector.load %arg20[%c0_39, %c0_40] : memref<4x1xf32, #tpu.memory_space<vmem>>, vector<4x1xf32>
      %74 = arith.mulf %60, %60 : vector<4x128xf32>
      %cst_41 = arith.constant dense<0.000000e+00> : vector<4xf32>
      %75 = vector.multi_reduction <add>, %74, %cst_41 [1] : vector<4x128xf32> to vector<4xf32>
      %76 = vector.shape_cast %75 : vector<4xf32> to vector<4x1xf32>
      %77 = arith.addf %73, %76 : vector<4x1xf32>
      %c0_42 = arith.constant 0 : index
      %c0_43 = arith.constant 0 : index
      %78 = vector.load %arg20[%c0_42, %c0_43] : memref<4x1xf32, #tpu.memory_space<vmem>>, vector<4x1xf32>
      tpu.vector_store %arg20[%c0_42, %c0_43], %77 {strides = array<i32>} : memref<4x1xf32, #tpu.memory_space<vmem>>, vector<4x1xf32>,
    } else {
    }
    %c2_i32 = arith.constant 2 : i32
    %11 = arith.cmpi eq, %arg0, %c2_i32 : i32
    %12 = arith.extui %11 : i1 to i32
    %cst_3 = arith.constant 2.560000e+02 : f32
    %c0_i32_4 = arith.constant 0 : i32
    %13 = arith.cmpi ne, %12, %c0_i32_4 : i32
    scf.if %13 {
      %14 = arith.index_cast %arg1 : i32 to index
      %c0 = arith.constant 0 : index
      %c0_5 = arith.constant 0 : index
      %15 = vector.load %arg16[%14, %c0, %c0_5] : memref<2x4x128xf32, #tpu.memory_space<vmem>>, vector<1x4x128xf32>
      %16 = vector.shape_cast %15 : vector<1x4x128xf32> to vector<4x128xf32>
      %c0_6 = arith.constant 0 : index
      %c0_7 = arith.constant 0 : index
      %17 = vector.load %arg19[%c0_6, %c0_7] : memref<4x1xf32, #tpu.memory_space<vmem>>, vector<4x1xf32>
      %18 = vector.broadcast %cst_3 : f32 to vector<4x1xf32>
      %19 = arith.divf %17, %18 : vector<4x1xf32>
      %c0_8 = arith.constant 0 : index
      %c0_9 = arith.constant 0 : index
      %20 = vector.load %arg20[%c0_8, %c0_9] : memref<4x1xf32, #tpu.memory_space<vmem>>, vector<4x1xf32>
      %21 = vector.broadcast %cst_3 : f32 to vector<4x1xf32>
      %22 = arith.divf %20, %21 : vector<4x1xf32>
      %23 = arith.mulf %19, %19 : vector<4x1xf32>
      %24 = arith.subf %22, %23 : vector<4x1xf32>
      %c0_10 = arith.constant 0 : index
      %c0_11 = arith.constant 0 : index
      %25 = vector.load %arg13[%c0_10, %c0_11] : memref<4x1xf32, #tpu.memory_space<vmem>>, vector<4x1xf32>
      %cst_12 = arith.constant 9.99999974E-6 : f32
      %26 = vector.broadcast %cst_12 : f32 to vector<4x1xf32>
      %27 = arith.addf %24, %26 : vector<4x1xf32>
      %28 = math.rsqrt %27 : vector<4x1xf32>
      %29 = arith.mulf %25, %28 : vector<4x1xf32>
      %c0_13 = arith.constant 0 : index
      %c0_14 = arith.constant 0 : index
      %30 = vector.load %arg14[%c0_13, %c0_14] : memref<4x1xf32, #tpu.memory_space<vmem>>, vector<4x1xf32>
      %31 = arith.mulf %19, %29 : vector<4x1xf32>
      %32 = arith.subf %30, %31 : vector<4x1xf32>
      %33 = vector.broadcast %29 : vector<4x1xf32> to vector<4x128xf32>
      %34 = arith.mulf %16, %33 : vector<4x128xf32>
      %35 = vector.broadcast %32 : vector<4x1xf32> to vector<4x128xf32>
      %36 = arith.addf %34, %35 : vector<4x128xf32>
      %cst_15 = arith.constant 0.000000e+00 : f32
      %37 = vector.broadcast %cst_15 : f32 to vector<4x128xf32>
      %38 = arith.maximumf %36, %37 : vector<4x128xf32>
      %c0_16 = arith.constant 0 : index
      %c0_17 = arith.constant 0 : index
      %c0_18 = arith.constant 0 : index
      %39 = vector.load %arg15[%c0_16, %c0_17, %c0_18] : memref<1x4x128xf32, #tpu.memory_space<vmem>>, vector<1x4x128xf32>
      %40 = vector.shape_cast %39 : vector<1x4x128xf32> to vector<4x128xf32>
      %41 = vector.shape_cast %38 : vector<4x128xf32> to vector<1x4x128xf32>
      tpu.vector_store %arg15[%c0_16, %c0_17, %c0_18], %41 {strides = array<i32>} : memref<1x4x128xf32, #tpu.memory_space<vmem>>, vector<1x4x128xf32>,
    } else {
    }
    return
  }
  func.func @transform_0(%arg0: i32, %arg1: i32) -> (i32, i32, i32) {
    %c0_i32 = arith.constant 0 : i32
    %0 = arith.cmpi eq, %arg0, %c0_i32 : i32
    %c1_i32 = arith.constant 1 : i32
    %1 = arith.select %0, %arg1, %c1_i32 : i32
    %c0_i32_0 = arith.constant 0 : i32
    %c0_i32_1 = arith.constant 0 : i32
    %c0_i32_2 = arith.constant 0 : i32
    return %1, %c0_i32_0, %c0_i32_1 : i32, i32, i32
  }
  func.func @transform_1(%arg0: i32, %arg1: i32) -> (i32, i32, i32) {
    %c0_i32 = arith.constant 0 : i32
    %0 = arith.cmpi eq, %arg0, %c0_i32 : i32
    %c1_i32 = arith.constant 1 : i32
    %1 = arith.select %0, %arg1, %c1_i32 : i32
    %c0_i32_0 = arith.constant 0 : i32
    %c0_i32_1 = arith.constant 0 : i32
    %c0_i32_2 = arith.constant 0 : i32
    return %1, %c0_i32_0, %c0_i32_1 : i32, i32, i32
  }
  func.func @transform_2(%arg0: i32, %arg1: i32) -> (i32, i32) {
    %c0_i32 = arith.constant 0 : i32
    %c0_i32_0 = arith.constant 0 : i32
    %c0_i32_1 = arith.constant 0 : i32
    return %c0_i32, %c0_i32_0 : i32, i32
  }
  func.func @transform_3(%arg0: i32, %arg1: i32) -> (i32, i32) {
    %c0_i32 = arith.constant 0 : i32
    %c0_i32_0 = arith.constant 0 : i32
    %c0_i32_1 = arith.constant 0 : i32
    return %c0_i32, %c0_i32_0 : i32, i32
  }
  func.func @transform_4(%arg0: i32, %arg1: i32) -> (i32, i32, i32) {
    %c0_i32 = arith.constant 0 : i32
    %c0_i32_0 = arith.constant 0 : i32
    %c0_i32_1 = arith.constant 0 : i32
    %c0_i32_2 = arith.constant 0 : i32
    return %c0_i32, %c0_i32_0, %c0_i32_1 : i32, i32, i32
  }
  func.func @transform_5(%arg0: i32, %arg1: i32) -> (i32, i32) {
    %c0_i32 = arith.constant 0 : i32
    %c0_i32_0 = arith.constant 0 : i32
    %c0_i32_1 = arith.constant 0 : i32
    return %c0_i32, %c0_i32_0 : i32, i32
  }
  func.func @transform_6(%arg0: i32, %arg1: i32) -> (i32, i32, i32) {
    %c0_i32 = arith.constant 0 : i32
    %c0_i32_0 = arith.constant 0 : i32
    %c0_i32_1 = arith.constant 0 : i32
    %c0_i32_2 = arith.constant 0 : i32
    return %c0_i32, %c0_i32_0, %c0_i32_1 : i32, i32, i32
  }
  func.func @transform_7(%arg0: i32, %arg1: i32) -> (i32, i32, i32) {
    %c0_i32 = arith.constant 0 : i32
    %c0_i32_0 = arith.constant 0 : i32
    %c0_i32_1 = arith.constant 0 : i32
    %c0_i32_2 = arith.constant 0 : i32
    return %c0_i32, %c0_i32_0, %c0_i32_1 : i32, i32, i32
  }
  func.func @transform_8(%arg0: i32, %arg1: i32) -> (i32, i32) {
    %c0_i32 = arith.constant 0 : i32
    %c0_i32_0 = arith.constant 0 : i32
    %c0_i32_1 = arith.constant 0 : i32
    return %c0_i32, %c0_i32_0 : i32, i32
  }
  func.func @transform_9(%arg0: i32, %arg1: i32) -> (i32, i32) {
    %c0_i32 = arith.constant 0 : i32
    %c0_i32_0 = arith.constant 0 : i32
    %c0_i32_1 = arith.constant 0 : i32
    return %c0_i32, %c0_i32_0 : i32, i32
  }
  func.func @transform_10(%arg0: i32, %arg1: i32) -> (i32, i32, i32) {
    %c0_i32 = arith.constant 0 : i32
    %c0_i32_0 = arith.constant 0 : i32
    %c0_i32_1 = arith.constant 0 : i32
    %c0_i32_2 = arith.constant 0 : i32
    return %c0_i32, %c0_i32_0, %c0_i32_1 : i32, i32, i32
  }
  func.func @transform_11(%arg0: i32, %arg1: i32) -> (i32, i32) {
    %c0_i32 = arith.constant 0 : i32
    %c0_i32_0 = arith.constant 0 : i32
    %c0_i32_1 = arith.constant 0 : i32
    return %c0_i32, %c0_i32_0 : i32, i32
  }
  func.func @transform_12(%arg0: i32, %arg1: i32) -> (i32, i32) {
    %c0_i32 = arith.constant 0 : i32
    %c0_i32_0 = arith.constant 0 : i32
    %c0_i32_1 = arith.constant 0 : i32
    return %c0_i32, %c0_i32_0 : i32, i32
  }
  func.func @transform_13(%arg0: i32, %arg1: i32) -> (i32, i32, i32) {
    %c2_i32 = arith.constant 2 : i32
    %0 = arith.cmpi eq, %arg0, %c2_i32 : i32
    %c0_i32 = arith.constant 0 : i32
    %1 = arith.select %0, %arg1, %c0_i32 : i32
    %c0_i32_0 = arith.constant 0 : i32
    %c0_i32_1 = arith.constant 0 : i32
    %c0_i32_2 = arith.constant 0 : i32
    return %1, %c0_i32_0, %c0_i32_1 : i32, i32, i32
  }
}

</mosaic_0001>

<bundles_post_ra>
// kernel: up1d_forward.1
= control target key start
LH: loop header
LB: loop body
LE: loop exit
PB: predicated region body
PF: predicated region fallthrough
CT: control target
= control target key end

     0   :  { %18 = vsyncpa [#allocation8], 0  ;;  %s2229_s0 = inlined_call_operand.vmem [shape: f32[2,8,64], index: 0, kind: input, shape index: {}]   ;;  %s2230_s1 = inlined_call_operand.vmem [shape: f32[2,4,128], index: 1, kind: input, shape index: {}]   ;;  %s2231_s2 = inlined_call_operand.vmem [shape: f32[64,128], index: 2, kind: input, shape index: {}]   ;;  %s2232_s3 = inlined_call_operand.vmem [shape: f32[64,128], index: 3, kind: input, shape index: {}]   ;;  %s2233_s4 = inlined_call_operand.vmem [shape: bf16[2,4,8], index: 4, kind: input, shape index: {}]   ;;  %s2234_s5 = inlined_call_operand.vmem [shape: f32[4,1], index: 5, kind: input, shape index: {}]   ;;  %s2235_s6 = inlined_call_operand.vmem [shape: bf16[3,4,4], index: 6, kind: input, shape index: {}]   ;;  %s2236_s7 = inlined_call_operand.vmem [shape: bf16[3,4,4], index: 7, kind: input, shape index: {}]   ;;  %s2237_s8 = inlined_call_operand.vmem [shape: f32[4,1], index: 8, kind: input, shape index: {}]   ;;  %s2238_s9 = inlined_call_operand.vmem [shape: f32[4,1], index: 9, kind: input, shape index: {}]   ;;  %s2239_s10 = inlined_call_operand.vmem [shape: bf16[3,4,4], index: 10, kind: input, shape index: {}]   ;;  %s2240_s11 = inlined_call_operand.vmem [shape: f32[4,1], index: 11, kind: input, shape index: {}]   ;;  %s2241_s12 = inlined_call_operand.vmem [shape: f32[4,1], index: 12, kind: input, shape index: {}]   ;;  %s2242_s13 = inlined_call_operand.hbm [shape: f32[2,4,128], index: 13, kind: output, shape index: {}]  }
   0x1   :  { %20 = vsyncpa [#allocation8 + $0x1], 0  ;;  %s1922_s25 = smov 0   ;;  %s1924_s26 = smov 0  }
   0x2   :  { %s1926_s27 = smov 0   ;;  %s1928_s28 = smov 0  }
   0x3   :  { %s1930_s29 = smov 0   ;;  %s1932_s30 = smov 0  }
   0x4   :  { %s1934_s14 = smov 0   ;;  %s1936_s15 = smov 0  }
   0x5 LB: > { %2250 = sst [smem:[#allocation10_spill]] %s1815_s27  ;;  %s1436_s16 = sadd.s32 4294967295, %s1835_s15   ;;  %s1835_s15 = sphi %s1936_s15, %s26_s15   ;;  %s1831_s14 = sphi %s1934_s14, %s2268_s14   ;;  %s1827_s30 = sphi %s1932_s30, %s2267_s30   ;;  %s1823_s29 = sphi %s1930_s29, %s2266_s29   ;;  %s1819_s28 = sphi %s1928_s28, %s2265_s28   ;;  %s1815_s27 = sphi %s1926_s27, %s2264_s27   ;;  %s1811_s26 = sphi %s1924_s26, %s2270_s26   ;;  %s1807_s25 = sphi %s1922_s25, %s2269_s25  }
   0x6   : > { %2251 = sst [smem:[#allocation11_spill]] %s1827_s30  ;;  %s35_s17 = sadd.s32 1, %s1827_s30 }
   0x7   : > { %2252 = sst [smem:[#allocation12_spill]] %s1831_s14  ;;  %s38_s18 = sadd.s32 1, %s1831_s14 }
   0x8   : > { %p36_p0 = scmp.ge.s32.totalorder %s35_s17, 2  ;;  %p333_p1 = scmp.eq.s32.totalorder %s1831_s14, 2 }
   0x9   : > { %s1437_s19 = sadd.s32 4294967294, %s1835_s15   ;;  %p350_p2 = scmp.ne.s32.totalorder %s1815_s27, %s1811_s26 }
   0xa   : > { %s2272_s17 = smov (%p36_p0, %s35_s17), 0  ;;  %s2274_s18 = smov (!%p36_p0, %s38_s18), %s1831_s14 }
   0xb   : > { %2253 = sst [smem:[#allocation13_spill]] %s2272_s17  ;;  %p40_p3 = scmp.ge.s32.totalorder %s2274_s18, 3 }
   0xc   : > { %s334_s20 = scalar_select %p333_p1, %s1827_s30, 0 }
   0xd   : > { %p351_p4 = scmp.eq.s32.totalorder %s1436_s16, 5  ;;  %p356_p5 = scmp.ne.s32.totalorder %s1811_s26, %s1807_s25 }
   0xe   : > { %p357_p6 = scmp.eq.s32.totalorder %s1437_s19, 5  ;;  %s2276_s18 = smov (%p40_p3, %s2274_s18), 0 }
   0xf   : > { %2254 = sst [smem:[#allocation14_spill]] %s2276_s18  ;;  %p1977_p7 = por %p351_p4, %p350_p2 }
  0x10   : > { %p1981_p8 = por %p357_p6, %p356_p5  ;;  %p335_p9 = scmp.eq.s32.totalorder %s2276_s18, 2 }
  0x11   : > { %p1440_p10 = scmp.ge.s32.totalorder %s1835_s15, 1  ;;  %p430_p11 = scmp.lt.s32.totalorder %s1835_s15, 7 }
  0x12   : > { %s2256_s22 = scalar_select %p1981_p8, 1, 0 }
  0x13   : > { %s336_s23 = scalar_select %p335_p9, %s2272_s17, 0 }
  0x14   : > { %2257 = sst [smem:[#allocation15_spill]] %s2256_s22  ;;  %p431_p12 = pnand %p1440_p10, %p430_p11 }
  0x15   : > { %s337_s24 = ssub.s32 %s334_s20, %s336_s23  ;;  %s340_s16 = sadd.s32 1, %s1815_s27  ;;  %v500_v0 = vlaneseq (!%p431_p12) }
  0x16   : > { %p338_p13 = scmp.eq.s32.totalorder %s337_s24, 0  ;;  %434 = sbr.rel (%p431_p12) target bundleno = 1814 (0x716), region = 72 }
  0x17   : > { %s2248_s14 = sand.u32 (!%p431_p12), 1, %s1811_s26   ;;  %p481_p0 = scmp.eq.s32.totalorder (!%p431_p12), %s1823_s29, 0  ;;  %v1999_v1 = vand.u32 (!%p431_p12), 127, %v500_v0 }
  0x18   : > { %s1991_s19 = scalar_select %p338_p13, %s1815_s27, %s340_s16  }
  0x19   : > { %s1997_s30 = sshll.u32 (!%p431_p12), %s2248_s14, 2  ;;  %vm502_vm0 = vcmp.gt.s32.totalorder (!%p431_p12), %v1999_v1, 0  ;;  %vm503_vm1 = vcmp.lt.s32.totalorder (!%p431_p12), %v1999_v1, 127  ;;  %p1444_p2 = scmp.ne.s32.totalorder (!%p431_p12), %s1823_s29, 0 }
  0x1a   : > { %2258 = sst [smem:[#allocation16_spill]] %s1991_s19 }
  0x1d   : > { %s482_s18 = scalar_select %p481_p0, %s1819_s28, 1 }
  0x1e   : > { %507 = sbr.rel (%p1444_p2) target bundleno = 970 (0x3ca), region = 76  ;;  %vm517_vm2 = vcmask (!%p1444_p2), 1043456   ;;  %v1837_v3 = vmov (!%p1444_p2), 0.0   ;;  %v614_v5 = vld [vmem:[%s2232_s3] sm:$0xff] (!%p1444_p2)  ;;  %v615_v6 = vld [vmem:[%s2232_s3 + $0x8] sm:$0xff] (!%p1444_p2)  ;;  %vm1838_vm3 = vmmov (!%p1444_p2), 0  }
  0x1f   : > { %p483_p1 = scmp.lt.s32.totalorder %s482_s18, 1  ;;  %1516 = vmatprep.subr.bf16.mxu0 (!%p1444_p2), %v1837_v3  ;;  %1522 = vmatprep.subr.bf16.mxu1 (!%p1444_p2), %v1837_v3  ;;  %v606_v7 = vld [vmem:[%s2231_s2] sm:$0xff] (!%p1444_p2)  ;;  %v607_v8 = vld [vmem:[%s2231_s2 + $0x8] sm:$0xff] (!%p1444_p2)  ;;  %vm513_vm4 = vcmask (!%p1444_p2), 64512   ;;  %v1621_v12 = vpack.c.bf16 (!%p1444_p2), %v615_v6, %v614_v5  ;;  %v616_v14 = vld [vmem:[%s2232_s3 + $0x10] sm:$0xff] (!%p1444_p2)  ;;  %v1839_v15 = vmov (!%p1444_p2), 0.0|0.0  }
  0x20   : > { %1518 = vmatprep.mubr.msk.bf16.mxu0 (!%p1444_p2), %vm1838_vm3, %v1837_v3  ;;  %1524 = vmatprep.mubr.msk.bf16.mxu1 (!%p1444_p2), %vm1838_vm3, %v1837_v3  ;;  %v512_v10 = vld [vmem:[%s2233_s4] sm:$0x3] (!%p1444_p2)  ;;  %v1446_v11 = vld [vmem:[%s2233_s4 + $0x2] sm:$0x3] (!%p1444_p2)  ;;  %v1633_v13 = vpack.c.bf16 (!%p1444_p2), %v607_v8, %v606_v7  ;;  %v617_v16 = vld [vmem:[%s2232_s3 + $0x18] sm:$0xff] (!%p1444_p2)  ;;  %v1840_v34 = vmov (!%p1444_p2), 0  }
  0x21   : > { %s2278_s18 = smov (!%p483_p1, %s482_s18), 1  ;;  %v608_v17 = vld [vmem:[%s2231_s2 + $0x10] sm:$0xff] (!%p1444_p2)  ;;  %v609_v18 = vld [vmem:[%s2231_s2 + $0x18] sm:$0xff] (!%p1444_p2)  ;;  %v1624_v19 = vpack.c.bf16 (!%p1444_p2), %v617_v16, %v616_v14  ;;  %v618_v21 = vld [vmem:[%s2232_s3 + $0x20] sm:$0xff] (!%p1444_p2)  ;;  %1734 = vset.pattern.permute.xlu0 (!%p1444_p2), %v1840_v34  ;;  %vm622_vm5 = vcmask (!%p1444_p2), 523264   ;;  %vm783_vm6 = vcmask (!%p1444_p2), 1041408  }
  0x22   : > { %s1442_s20 = sshll.u32 %s2278_s18, 3  ;;  %s1443_s23 = sshll.u32 %s2278_s18, 2  ;;  %v1636_v20 = vpack.c.bf16 (!%p1444_p2), %v609_v18, %v608_v17  ;;  %v619_v22 = vld [vmem:[%s2232_s3 + $0x28] sm:$0xff] (!%p1444_p2)  ;;  %v610_v23 = vld [vmem:[%s2231_s2 + $0x20] sm:$0xff] (!%p1444_p2)  ;;  %v620_v27 = vld [vmem:[%s2232_s3 + $0x30] sm:$0xff] (!%p1444_p2)  ;;  %vm779_vm7 = vcmask (!%p1444_p2), 31744  }
  0x23   : > { %s486_s17 = scalar_lea.vmem %s2229_s0, %s1442_s20  ;;  %s2010_s14 = scalar_lea.vmem %s2230_s1, %s1443_s23  ;;  %v611_v24 = vld [vmem:[%s2231_s2 + $0x28] sm:$0xff] (!%p1444_p2)  ;;  %v1627_v25 = vpack.c.bf16 (!%p1444_p2), %v619_v22, %v618_v21  ;;  %v621_v28 = vld [vmem:[%s2232_s3 + $0x38] sm:$0xff] (!%p1444_p2)  ;;  %v612_v29 = vld [vmem:[%s2231_s2 + $0x30] sm:$0xff] (!%p1444_p2) }
  0x24   : > { %v508_v2 = vld [vmem:[%s486_s17] sm:$0xff] (!%p1444_p2)  ;;  %v1639_v26 = vpack.c.bf16 (!%p1444_p2), %v611_v24, %v610_v23  ;;  %v613_v30 = vld [vmem:[%s2231_s2 + $0x38] sm:$0xff] (!%p1444_p2)  ;;  %v1630_v31 = vpack.c.bf16 (!%p1444_p2), %v621_v28, %v620_v27  ;;  %s1842_s19 = smov (!%p1444_p2), 127   ;;  %s1460_s23 = sshll.u32 (!%p1444_p2), %s1819_s28, 2 }
  0x25   : > { %v509_v4 = vpack.c.bf16 %v508_v2, %v508_v2  ;;  %v1642_v32 = vpack.c.bf16 %v613_v30, %v612_v29  ;;  %v769_v33 = vld [vmem:[%s2234_s5] sm:$0xf]  ;;  %v1457_v57 = vld [vmem:[%s2236_s7 + $0x4] sm:$0x3]  ;;  %s1066_s16 = scalar_lea.vmem [#allocation2], %s1460_s23  ;;  %p1461_p3 = scmp.ne.s32.totalorder %s1819_s28, 0 }
  0x26   : > { %772 = vperm.xlu0 %1734, %v769_v33   ;;  %v510_v43 = vld [vmem:[%s2010_s14] sm:$0xf]  ;;  %v1456_v59 = vld [vmem:[%s2235_s6 + $0x4] sm:$0x3]  ;;  %s1841_s14 = smov 1   ;;  %vm1072_vm8 = vcmask (!%p1461_p3), 3072  }
  0x27   : > { %v519_v9 = vsel %vm517_vm2, %v509_v4, 0  ;;  %v511_v44 = vpack.c.bf16 %v510_v43, %v510_v43  ;;  %v777_v46 = vld [vmem:[%s2235_s6] sm:$0x3]  ;;  %v1453_v58 = vld [vmem:[%s2236_s7 + $0x2] sm:$0x3] }
  0x28   : > { %1517 = vmatpush3.bf16.msra.mxu0 %v519_v9  ;;  %1523 = vmatpush3.bf16.msra.mxu1 %v519_v9  ;;  %v778_v56 = vld [vmem:[%s2236_s7] sm:$0x3]  ;;  %v1452_v60 = vld [vmem:[%s2235_s6 + $0x2] sm:$0x3] }
  0x29   : > { %1620 = vmatprep.subr.bf16.mxu0 %v1839_v15  ;;  %1632 = vmatprep.subr.bf16.mxu1 %v1839_v15  ;;  %v831_v45 = vsel %vm783_vm6, %v511_v44, 0 }
  0x2b   : > { %1519 = vmatmul.mubr.msk.bf16.vlgmr.msra.gmra.mrb[0].mxu0 %vm513_vm4, %v512_v10  ;;  %1525 = vmatmul.mubr.msk.bf16.vlgmr.msra.gmra.mrb[0].mxu1 %vm513_vm4, %v1446_v11 }
  0x2c   : > { %1622 = vmatpush3.bf16.msra.mxu0 %v1621_v12  ;;  %1634 = vmatpush3.bf16.msra.mxu1 %v1633_v13 }
  0x2d   : > { %1623 = vmatprep.subr.bf16.mxu0 %v1839_v15  ;;  %1635 = vmatprep.subr.bf16.mxu1 %v1839_v15 }
  0x2e   : > { %1544 = vmatprep.mubr.msk.f32.mxu0 %vm1838_vm3, %v1837_v3  ;;  %1563 = vmatprep.mubr.msk.f32.mxu1 %vm1838_vm3, %v1837_v3 }
  0x30   : > { %1625 = vmatpush3.bf16.msra.mxu0 %v1624_v19  ;;  %1637 = vmatpush3.bf16.msra.mxu1 %v1636_v20 }
  0x31   : > { %1626 = vmatprep.subr.bf16.mxu0 %v1839_v15  ;;  %1638 = vmatprep.subr.bf16.mxu1 %v1839_v15 }
  0x34   : > { %1628 = vmatpush3.bf16.msra.mxu0 %v1627_v25  ;;  %1640 = vmatpush3.bf16.msra.mxu1 %v1639_v26  ;;  %v1843_v26 = vmov (!%p1461_p3), 0.0  }
  0x35   : > { %1629 = vmatprep.subr.bf16.mxu0 %v1839_v15  ;;  %1641 = vmatprep.subr.bf16.mxu1 %v1839_v15  ;;  %1073 = vst.msk [vmem:[#allocation3] sm:$0xf] (!%p1461_p3), %vm1072_vm8, %v1843_v26  ;;  %1074 = vst.msk [vmem:[#allocation4] sm:$0xf] (!%p1461_p3), %vm1072_vm8, %v1843_v26 }
  0x38   : > { %1631 = vmatpush3.bf16.msra.mxu0 %v1630_v31  ;;  %1643 = vmatpush3.bf16.msra.mxu1 %v1642_v32 }
  0x39   : > { %1572 = vmatprep.subr.bf16.mxu0 %v1837_v3  ;;  %1566 = vmatprep.subr.bf16.mxu1 %v1837_v3 }
  0xa5   : > { %v773_v47 = vpop.permute.xlu0 %772 }
  0xfe   : > { %v555_v35 = vpop.f32.mrb[0].mxu0  ;;  %v600_v36 = vpop.f32.mrb[0].mxu1 }
  0xff   : > { %v1520_v37 = vpop.f32.mrb[1].mxu0  ;;  %v1526_v38 = vpop.f32.mrb[1].mxu1  ;;  %1545 = vmatmul.mubr.msk.f32.vlgmr.msra.gmra.mrb[4].mxu0 %vm622_vm5, %v600_v36  ;;  %1564 = vmatmul.mubr.msk.f32.vlgmr.msra.gmra.mrb[4].mxu1 %vm622_vm5, %v555_v35 }
 0x100   : > { %v558_v39 = vpop.f32.mrb[2].mxu0  ;;  %v603_v40 = vpop.f32.mrb[2].mxu1  ;;  %1574 = vmatprep.mubr.msk.bf16.mxu0 %vm1838_vm3, %v1837_v3  ;;  %1568 = vmatprep.mubr.msk.bf16.mxu1 %vm1838_vm3, %v1837_v3 }
 0x101   : > { %v1521_v41 = vpop.f32.mrb[3].mxu0  ;;  %v1527_v42 = vpop.f32.mrb[3].mxu1  ;;  %1573 = vmatpush3.bf16.msra.mxu0 %v831_v45 }
 0x102   : > { %1590 = vmatprep.subr.bf16.mxu0 %v1837_v3 }
 0x104   : > { %1575 = vmatmul.mubr.msk.bf16.vlgmr.msra.gmra.mrb[8].mxu0 %vm779_vm7, %v777_v46 }
 0x105   : > { %1592 = vmatprep.mubr.msk.bf16.mxu0 %vm1838_vm3, %v1837_v3 }
 0x1d2   : > { %v692_v48 = vpop.f32.mrb[4].mxu0  ;;  %v765_v49 = vpop.f32.mrb[4].mxu1 }
 0x1d3   : > { %v766_v50 = vadd.f32 %v765_v49, %v692_v48  ;;  %v1546_v51 = vpop.f32.mrb[5].mxu0  ;;  %v1565_v52 = vpop.f32.mrb[5].mxu1 }
 0x1d5   : > { %v775_v53 = vadd.f32 %v773_v47, %v766_v50 }
 0x1d7   : > { %v776_v54 = vpack.c.bf16 %v775_v53, %v775_v53  ;;  %v867_v61 = vpop.f32.mrb[8].mxu0 }
 0x1d8   : > { %v1576_v62 = vpop.f32.mrb[9].mxu0 }
 0x1d9   : > { %v785_v55 = vsel %vm783_vm6, %v776_v54, 0  ;;  %v870_v63 = vpop.f32.mrb[10].mxu0 }
 0x1da   : > { %1567 = vmatpush3.bf16.msra.mxu1 %v785_v55  ;;  %1591 = vmatpush3.bf16.msra.mxu0 %v785_v55  ;;  %v1577_v0 = vpop.f32.mrb[11].mxu0 }
 0x1db   : > { %1578 = vmatprep.subr.bf16.mxu1 %v1837_v3  ;;  %1596 = vmatprep.subr.bf16.mxu0 %v1837_v3 }
 0x1dd   : > { %1569 = vmatmul.mubr.msk.bf16.vlgmr.msra.gmra.mrb[8].mxu1 %vm779_vm7, %v778_v56  ;;  %1593 = vmatmul.mubr.msk.bf16.vlgmr.msra.gmra.mrb[12].mxu0 %vm779_vm7, %v1457_v57 }
 0x1de   : > { %1579 = vmatpush3.bf16.msra.mxu1 %v785_v55  ;;  %1597 = vmatpush3.bf16.msra.mxu0 %v831_v45 }
 0x1df   : > { %1598 = vmatprep.mubr.msk.bf16.mxu0 %vm1838_vm3, %v1837_v3  ;;  %1580 = vmatprep.mubr.msk.bf16.mxu1 %vm1838_vm3, %v1837_v3 }
 0x1e0   : > { %1584 = vmatprep.subr.bf16.mxu1 %v1837_v3 }
 0x1e5   : > { %1581 = vmatmul.mubr.msk.bf16.vlgmr.msra.gmra.mrb[12].mxu1 %vm779_vm7, %v1453_v58 }
 0x1e6   : > { %1585 = vmatpush3.bf16.msra.mxu1 %v831_v45  ;;  %1586 = vmatprep.mubr.msk.bf16.mxu1 %vm1838_vm3, %v1837_v3 }
 0x1e9   : > { %1599 = vmatmul.mubr.msk.bf16.vlgmr.msra.gmra.mrb[12].mxu0 %vm779_vm7, %v1456_v59 }
 0x1ed   : > { %1587 = vmatmul.mubr.msk.bf16.vlgmr.msra.gmra.mrb[16].mxu1 %vm779_vm7, %v1452_v60 }
 0x2b0   : > { %v821_v2 = vpop.f32.mrb[8].mxu1 }
 0x2b1   : > { %v868_v4 = vadd.f32 %v867_v61, %v821_v2  ;;  %v1570_v5 = vpop.f32.mrb[9].mxu1 }
 0x2b2   : > { %v824_v6 = vpop.f32.mrb[10].mxu1 }
 0x2b3   : > { %1053 = vrot.lane.b32.xlu0 %v868_v4, %s1841_s14  ;;  %v1571_v7 = vpop.f32.mrb[11].mxu1 }
 0x2b8   : > { %v914_v3 = vpop.f32.mrb[12].mxu1 }
 0x2b9   : > { %v1582_v8 = vpop.f32.mrb[13].mxu1 }
 0x2ba   : > { %v917_v9 = vpop.f32.mrb[14].mxu1 }
 0x2bb   : > { %v1583_v10 = vpop.f32.mrb[15].mxu1 }
 0x2bc   : > { %v1047_v11 = vpop.f32.mrb[12].mxu0 }
 0x2bd   : > { %1059 = vrot.lane.b32.xlu1 %v1047_v11, %s1842_s19  ;;  %v1600_v12 = vpop.f32.mrb[13].mxu0 }
 0x2be   : > { %v1050_v13 = vpop.f32.mrb[14].mxu0 }
 0x2bf   : > { %v1601_v14 = vpop.f32.mrb[15].mxu0 }
 0x2c0   : > { %v957_v15 = vpop.f32.mrb[16].mxu1 }
 0x2c1   : > { %v958_v16 = vadd.f32 %v957_v15, %v914_v3  ;;  %v1588_v17 = vpop.f32.mrb[17].mxu1 }
 0x2c2   : > { %v960_v18 = vpop.f32.mrb[18].mxu1 }
 0x2c3   : > { %v1589_v19 = vpop.f32.mrb[19].mxu1 }
 0x325   : > { %v1054_v20 = vpop.permute.xlu0 %1053 }
 0x326   : > { %v1057_v21 = vsel %vm502_vm0, %v1054_v20, 0.0 }
 0x327   : > { %v1058_v22 = vadd.f32 %v1057_v21, %v958_v16 }
 0x32d   : > { %1071 = sbr.rel (%p1461_p3) target bundleno = 820 (0x334), region = 80 }
 0x32f   : > { %v1060_v23 = vpop.permute.xlu1 %1059 }
 0x330   : > { %v1063_v24 = vsel %vm503_vm1, %v1060_v23, 0.0 }
 0x331   : > { %v1064_v25 = vadd.f32 %v1063_v24, %v1058_v22 }
 0x333   : > { %1067 = vst [vmem:[%s1066_s16] sm:$0xf] %v1064_v25 }
 0x334 PF: > { %v1076_v27 = vsel %vm517_vm2, %v1064_v25, 0.0  ;;  %v1083_v28 = vmul.f32 %v1064_v25, %v1064_v25  ;;  %v1075_v30 = vld [vmem:[#allocation3] sm:$0xf]  ;;  %vm1080_vm9 = vcmask 3072   ;;  %v1082_v33 = vld [vmem:[#allocation4] sm:$0xf] }
 0x335   : > { %1077 = vadd.xlane.f32.xlu0 %v1076_v27 }
 0x336   : > { %v1084_v29 = vsel %vm517_vm2, %v1083_v28, 0.0 }
 0x339   : > { %1085 = vadd.xlane.f32.xlu0 %v1084_v29 }
 0x3c2   : > { %v1078_v31 = vpop.xlane.xlu0 %1077 }
 0x3c3   : > { %v1079_v32 = vadd.f32 %v1078_v31, %v1075_v30 }
 0x3c5   : > { %1081 = vst.msk [vmem:[#allocation3] sm:$0xf] %vm1080_vm9, %v1079_v32 }
 0x3c6   : > { %v1086_v34 = vpop.xlane.xlu0 %1085 }
 0x3c7   : > { %v1087_v35 = vadd.f32 %v1086_v34, %v1082_v33 }
 0x3c9   : > { %1088 = vst.msk [vmem:[#allocation4] sm:$0xf] %vm1080_vm9, %v1087_v35 }
 0x3ca PF: > { %p1462_p4 = scmp.ne.s32.totalorder %s1823_s29, 1 }
 0x3cb   : > { %v1844_v38 = vmov (!%p1462_p4), 0   ;;  %v1103_v44 = vld [vmem:[%s2237_s8] sm:$0xf] (!%p1462_p4)  ;;  %v1845_v50 = vmov (!%p1462_p4), 0.0   ;;  %vm1846_vm10 = vmmov (!%p1462_p4), 0   ;;  %s1463_s27 = sshll.u32 (!%p1462_p4), %s1819_s28, 2 }
 0x3cc   : > { %1092 = sbr.rel (%p1462_p4) target bundleno = 1624 (0x658), region = 84  ;;  %v1096_v36 = vld [vmem:[#allocation3] sm:$0xf] (!%p1462_p4)  ;;  %1735 = vset.pattern.permute.xlu0 (!%p1462_p4), %v1844_v38  ;;  %v1107_v47 = vld [vmem:[%s2238_s9] sm:$0xf] (!%p1462_p4)  ;;  %1602 = vmatprep.subr.bf16.mxu0 (!%p1462_p4), %v1845_v50  ;;  %s2145_s17 = scalar_lea.vmem (!%p1462_p4), [#allocation2], %s1463_s27 }
 0x3cd   : > { %v1098_v39 = vmul.f32 (!%p1462_p4), 0.00390625, %v1096_v36  ;;  %1608 = vmatprep.subr.bf16.mxu1 (!%p1462_p4), %v1845_v50  ;;  %1604 = vmatprep.mubr.msk.bf16.mxu0 (!%p1462_p4), %vm1846_vm10, %v1845_v50  ;;  %v1095_v52 = vld [vmem:[%s2145_s17] sm:$0xf] (!%p1462_p4)  ;;  %vm1129_vm11 = vcmask (!%p1462_p4), 1041408   ;;  %vm1125_vm12 = vcmask (!%p1462_p4), 31744   ;;  %s1847_s24 = smov (!%p1462_p4), 1  }
 0x3ce   : > { %1610 = vmatprep.mubr.msk.bf16.mxu1 (!%p1462_p4), %vm1846_vm10, %v1845_v50  ;;  %v1124_v59 = vld [vmem:[%s2239_s10] sm:$0x3] (!%p1462_p4)  ;;  %v1466_v60 = vld [vmem:[%s2239_s10 + $0x4] sm:$0x3] (!%p1462_p4)  ;;  %v1465_v61 = vld [vmem:[%s2239_s10 + $0x2] sm:$0x3] (!%p1462_p4) }
 0x3cf   : > { %v1101_v41 = vmul.f32 (!%p1462_p4), %v1098_v39, %v1098_v39  ;;  %s1848_s20 = smov (!%p1462_p4), 127   ;;  %p1469_p5 = scmp.ne.s32.totalorder (!%p1462_p4), %s1819_s28, 0 }
 0x3d0   : > { %v1099_v37 = vld [vmem:[#allocation4] sm:$0xf] (!%p1462_p4) }
 0x3d1   : > { %v1100_v40 = vmul.f32 (!%p1462_p4), 0.00390625, %v1099_v37 }
 0x3d3   : > { %v1102_v42 = vsub.f32 %v1100_v40, %v1101_v41  ;;  %vm1279_vm13 = vcmask (!%p1469_p5), 3072   ;;  %v1849_v17 = vmov (!%p1469_p5), 0.0  }
 0x3d4   : > { %1280 = vst.msk [vmem:[#allocation5] sm:$0xf] (!%p1469_p5), %vm1279_vm13, %v1849_v17  ;;  %1281 = vst.msk [vmem:[#allocation6] sm:$0xf] (!%p1469_p5), %vm1279_vm13, %v1849_v17 }
 0x3d5   : > { %v1104_v43 = vadd.f32 1e-05, %v1102_v42 }
 0x3d7   : > { %1736 = vrsqrt.f32 %v1104_v43 }
 0x3e1   : > { %v1737_v45 = vpop.eup %1736 }
 0x3e2   : > { %v1106_v46 = vmul.f32 %v1737_v45, %v1103_v44 }
 0x3e4   : > { %1112 = vperm.xlu0 %1735, %v1106_v46   ;;  %v1108_v48 = vmul.f32 %v1106_v46, %v1098_v39 }
 0x3e6   : > { %v1109_v49 = vsub.f32 %v1107_v47, %v1108_v48 }
 0x3e8   : > { %1118 = vperm.xlu0 %1735, %v1109_v49  }
 0x463   : > { %v1113_v51 = vpop.permute.xlu0 %1112 }
 0x464   : > { %v1115_v53 = vmul.f32 %v1113_v51, %v1095_v52 }
 0x467   : > { %v1119_v54 = vpop.permute.xlu0 %1118 }
 0x468   : > { %v1121_v55 = vadd.f32 %v1119_v54, %v1115_v53 }
 0x46a   : > { %v1122_v56 = vmax.f32 %v1121_v55, 0.0 }
 0x46c   : > { %v1123_v57 = vpack.c.bf16 %v1122_v56, %v1122_v56 }
 0x46e   : > { %v1131_v58 = vsel %vm1129_vm11, %v1123_v57, 0 }
 0x46f   : > { %1603 = vmatpush3.bf16.msra.mxu0 %v1131_v58  ;;  %1609 = vmatpush3.bf16.msra.mxu1 %v1131_v58 }
 0x470   : > { %1614 = vmatprep.subr.bf16.mxu0 %v1845_v50 }
 0x472   : > { %1605 = vmatmul.mubr.msk.bf16.vlgmr.msra.gmra.mrb[0].mxu0 %vm1125_vm12, %v1124_v59  ;;  %1611 = vmatmul.mubr.msk.bf16.vlgmr.msra.gmra.mrb[0].mxu1 %vm1125_vm12, %v1466_v60 }
 0x473   : > { %1615 = vmatpush3.bf16.msra.mxu0 %v1131_v58  ;;  %1616 = vmatprep.mubr.msk.bf16.mxu0 %vm1846_vm10, %v1845_v50 }
 0x47a   : > { %1617 = vmatmul.mubr.msk.bf16.vlgmr.msra.gmra.mrb[4].mxu0 %vm1125_vm12, %v1465_v61 }
 0x545   : > { %v1167_v62 = vpop.f32.mrb[0].mxu0  ;;  %v1214_v63 = vpop.f32.mrb[0].mxu1 }
 0x546   : > { %1220 = vrot.lane.b32.xlu1 %v1167_v62, %s1847_s24  ;;  %v1606_v0 = vpop.f32.mrb[1].mxu0  ;;  %v1612_v2 = vpop.f32.mrb[1].mxu1 }
 0x547   : > { %v1170_v4 = vpop.f32.mrb[2].mxu0  ;;  %v1217_v5 = vpop.f32.mrb[2].mxu1 }
 0x548   : > { %v1607_v6 = vpop.f32.mrb[3].mxu0  ;;  %v1613_v7 = vpop.f32.mrb[3].mxu1 }
 0x54a   : > { %1268 = vrot.lane.b32.xlu1 %v1214_v63, %s1848_s20 }
 0x54d   : > { %v1262_v3 = vpop.f32.mrb[4].mxu0 }
 0x54e   : > { %v1618_v8 = vpop.f32.mrb[5].mxu0 }
 0x54f   : > { %v1265_v9 = vpop.f32.mrb[6].mxu0 }
 0x550   : > { %v1619_v10 = vpop.f32.mrb[7].mxu0 }
 0x5b8   : > { %v1221_v11 = vpop.permute.xlu1 %1220 }
 0x5b9   : > { %v1224_v12 = vsel %vm502_vm0, %v1221_v11, 0.0 }
 0x5ba   : > { %v1263_v13 = vadd.f32 %v1262_v3, %v1224_v12  ;;  %1278 = sbr.rel (%p1469_p5) target bundleno = 1473 (0x5c1), region = 88 }
 0x5bc   : > { %v1269_v14 = vpop.permute.xlu1 %1268 }
 0x5bd   : > { %v1272_v15 = vsel %vm503_vm1, %v1269_v14, 0.0 }
 0x5be   : > { %v1273_v16 = vadd.f32 %v1272_v15, %v1263_v13 }
 0x5c0   : > { %1274 = vst [vmem:[%s2145_s17] sm:$0xf] %v1273_v16 }
 0x5c1 PF: > { %vm1283_vm14 = vcmask 1043456   ;;  %v1291_v18 = vmul.f32 %v1273_v16, %v1273_v16  ;;  %v1282_v21 = vld [vmem:[#allocation5] sm:$0xf]  ;;  %vm1288_vm15 = vcmask 3072   ;;  %v1290_v23 = vld [vmem:[#allocation6] sm:$0xf] }
 0x5c2   : > { %v1284_v19 = vsel %vm1283_vm14, %v1273_v16, 0.0 }
 0x5c3   : > { %1285 = vadd.xlane.f32.xlu0 %v1284_v19  ;;  %v1292_v20 = vsel %vm1283_vm14, %v1291_v18, 0.0 }
 0x5c7   : > { %1293 = vadd.xlane.f32.xlu0 %v1292_v20 }
 0x650   : > { %v1286_v1 = vpop.xlane.xlu0 %1285 }
 0x651   : > { %v1287_v22 = vadd.f32 %v1286_v1, %v1282_v21 }
 0x653   : > { %1289 = vst.msk [vmem:[#allocation5] sm:$0xf] %vm1288_vm15, %v1287_v22 }
 0x654   : > { %v1294_v24 = vpop.xlane.xlu0 %1293 }
 0x655   : > { %v1295_v25 = vadd.f32 %v1294_v24, %v1290_v23 }
 0x657   : > { %1296 = vst.msk [vmem:[#allocation6] sm:$0xf] %vm1288_vm15, %v1295_v25 }
 0x658 PF: > { %p1470_p6 = scmp.ne.s32.totalorder %s1823_s29, 2 }
 0x659   : > { %v1850_v28 = vmov (!%p1470_p6), 0   ;;  %v1311_v34 = vld [vmem:[%s2240_s11] sm:$0xf] (!%p1470_p6)  ;;  %s1471_s23 = sshll.u32 (!%p1470_p6), %s1819_s28, 2  ;;  %s2259_s18 = scalar_lea.vmem (!%p1470_p6), [#allocation7], %s1997_s30 }
 0x65a   : > { %1300 = sbr.rel (%p1470_p6) target bundleno = 1787 (0x6fb), region = 92  ;;  %v1304_v26 = vld [vmem:[#allocation5] sm:$0xf] (!%p1470_p6)  ;;  %1738 = vset.pattern.permute.xlu0 (!%p1470_p6), %v1850_v28  ;;  %v1315_v37 = vld [vmem:[%s2241_s12] sm:$0xf] (!%p1470_p6)  ;;  %s1302_s16 = scalar_lea.vmem (!%p1470_p6), [#allocation2], %s1471_s23 }
 0x65b   : > { %v1306_v29 = vmul.f32 (!%p1470_p6), 0.00390625, %v1304_v26  ;;  %v1303_v41 = vld [vmem:[%s1302_s16] sm:$0xf] (!%p1470_p6) }
 0x65d   : > { %v1309_v31 = vmul.f32 (!%p1470_p6), %v1306_v29, %v1306_v29 }
 0x65e   : > { %v1307_v27 = vld [vmem:[#allocation6] sm:$0xf] (!%p1470_p6) }
 0x65f   : > { %v1308_v30 = vmul.f32 (!%p1470_p6), 0.00390625, %v1307_v27 }
 0x661   : > { %v1310_v32 = vsub.f32 %v1308_v30, %v1309_v31 }
 0x663   : > { %v1312_v33 = vadd.f32 1e-05, %v1310_v32 }
 0x665   : > { %1739 = vrsqrt.f32 %v1312_v33 }
 0x66f   : > { %v1740_v35 = vpop.eup %1739 }
 0x670   : > { %v1314_v36 = vmul.f32 %v1740_v35, %v1311_v34 }
 0x672   : > { %1320 = vperm.xlu0 %1738, %v1314_v36   ;;  %v1316_v38 = vmul.f32 %v1314_v36, %v1306_v29 }
 0x674   : > { %v1317_v39 = vsub.f32 %v1315_v37, %v1316_v38 }
 0x676   : > { %1326 = vperm.xlu0 %1738, %v1317_v39  }
 0x6f1   : > { %v1321_v40 = vpop.permute.xlu0 %1320 }
 0x6f2   : > { %v1323_v42 = vmul.f32 %v1321_v40, %v1303_v41 }
 0x6f5   : > { %v1327_v43 = vpop.permute.xlu0 %1326 }
 0x6f6   : > { %v1329_v44 = vadd.f32 %v1327_v43, %v1323_v42 }
 0x6f8   : > { %v1330_v45 = vmax.f32 %v1329_v44, 0.0 }
 0x6fa   : > { %1331 = vst [vmem:[%s2259_s18] sm:$0xf] %v1330_v45 }
 0x6fb PF: > { %p1340_p9 = scmp.eq.s32.totalorder %s1823_s29, 2  ;;  %s2260_s22 = scalar_lea.vmem [#allocation7], %s1997_s30 }
 0x6fc   : > { %s1348_s24 = sshll.u32 %s2260_s22, 4  ;;  %s2261_s19 = sand.u32 1, %s1811_s26   ;;  %s2178_s24 = int_to_ptr.vmem [resolvable:$true] %s1348_s24 }
 0x6fd   : > { %s2280_s28 = smov (!%p1340_p9, %s1819_s28), 0  ;;  %s1333_s23 = scalar_lea.sflag [#allocation8], %s2261_s19 }
 0x6fe   : > { %s1473_s20 = sshll.u32 %s2280_s28, 6  ;;  %s1741_s16 = scalar_lea.vmem %s2178_s24, 64 }
 0x6ff   : > { %s1346_s14 = scalar_lea.hbm %s2242_s13, %s1473_s20  ;;  %p1742_p10 = scmp.ne.s32.totalorder %s2178_s24, %s1741_s16 }
 0x700   : > { %s1851_s29 = smov [#allocation7]  }
 0x701   : > { %p1743_p11 = pnand %p1742_p10, %p1977_p7  ;;  %s1745_s30 = sshll.u32 %s1851_s29, 4  ;;  %s1746_s30 = int_to_ptr.vmem [resolvable:$false] %s1745_s30 }
 0x702   : > { %s1747_s18 = scalar_lea.vmem %s1746_s30, 128  ;;  %p1748_p13 = scmp.lt.s32.totalorder %s2178_s24, %s1746_s30 }
 0x703   : > { %p1744_p12 = pneg %p1743_p11  ;;  %p1749_p0 = scmp.lt.s32.totalorder %s1747_s18, %s1741_s16 }
 0x705   : > { %p1750_p1 = por %p1749_p0, %p1748_p13 }
 0x707   : > { %p1751_p2 = pnand %p1750_p1, %p1744_p12 }
 0x709   : > { %1754 = shalt.err (!%p1751_p2)
}
 0x70a   : > { %s1755_s28 = scalar_lea.hbm %s1346_s14, 64  ;;  %s1759_s27 = scalar_lea.hbm %s2242_s13, 128 }
 0x70b   : > { %p1756_p3 = scmp.ne.s32.totalorder %s1346_s14, %s1755_s28  ;;  %p1760_p6 = scmp.lt.u32.totalorder %s1346_s14, %s2242_s13 }
 0x70c   : > { %p1761_p9 = scmp.lt.u32.totalorder %s1759_s27, %s1755_s28  ;;  %p1763_p11 = scmp.lt.u32.totalorder %s1755_s28, %s1346_s14 }
 0x70d   : > { %p1757_p4 = pnand %p1756_p3, %p1977_p7 }
 0x70e   : > { %p1762_p10 = por %p1761_p9, %p1760_p6 }
 0x70f   : > { %p1758_p5 = pneg %p1757_p4 }
 0x710   : > { %p1764_p13 = por %p1763_p11, %p1762_p10 }
 0x712   : > { %p1765_p12 = pnand %p1764_p13, %p1758_p5 }
 0x714   : > { %1768 = shalt.err (!%p1765_p12)
}
 0x715   : > { %1649 = dma.vmem_to_hbm [thread:$0]  (%p1977_p7), %s2178_s24, 64, %s1346_s14, %s1333_s23  }
 0x716 PF: > { %p1655_p0 = scmp.ge.s32.totalorder %s1835_s15, 2  ;;  %s1360_s29 = sand.u32 1, %s1807_s25  }
 0x717   : > { %s1361_s30 = scalar_lea.sflag [#allocation8], %s1360_s29 }
 0x718   : > { %p1652_p1 = pnand %p1655_p0, %p1981_p8 }
 0x71a   : > { %1802 = dma.done.wait (!%p1652_p1), %s1361_s30, 64  }
 0x71b   : > { %1804 = vsyncadd (!%p1652_p1), %s1361_s30, 4294967232  ;;  %s26_s15 = sadd.s32 1, %s1835_s15   ;;  %s2263_s18 = sld [smem:[#allocation10_spill]] }
 0x71c   : > { %p23_p2 = scmp.ge.s32.totalorder %s26_s15, 8   ;;  %s2264_s27 = sld [smem:[#allocation16_spill]] }
 0x71d   : > { %s2265_s28 = sld [smem:[#allocation11_spill]]  ;;  %s2266_s29 = sld [smem:[#allocation12_spill]] }
 0x71e   : > { %s2267_s30 = sld [smem:[#allocation13_spill]]  ;;  %s2268_s14 = sld [smem:[#allocation14_spill]] }
 0x71f   : > { %s2269_s25 = smov %s1811_s26  ;;  %25 = sbr.rel (!%p23_p2) target bundleno = 5 (0x5), region = 140 }
 0x721   : > { %s2270_s26 = smov %s2263_s18 }
 0x726   :  { %1366 = vsyncpa [#allocation8], 1 }
 0x727   :  { %1368 = vsyncpa [#allocation8 + $0x1], 1 }

</bundles_post_ra>
